<compile_context>
chip_gen: v6e
topology: v6e:2x2x1
jax: 0.10.0
libtpu: 0.0.40
codegen_flags: <defaults>
</compile_context>

<pallas_src>
import jax
import jax.numpy as jnp
from jax.experimental import pallas as pl
from jax.experimental.pallas import tpu as pltpu

IN_DIM = 300
HID_DIM = 128
OUT_DIM = 300

# Lane-dense padded feature widths (multiples of 128).
IN_PAD = 384
OUT_PAD = 384


def _round_up(n: int, m: int) -> int:
    return ((n + m - 1) // m) * m


def _mlp_kernel(x_ref, w1_ref, b1_ref, w2_ref, b2_ref, o_ref):
    x = x_ref[...]
    h = jnp.dot(x, w1_ref[...], preferred_element_type=jnp.float32) + b1_ref[...]
    h = jnp.maximum(h, 0.0)
    y = jnp.dot(h.astype(w2_ref.dtype), w2_ref[...],
                preferred_element_type=jnp.float32) + b2_ref[...]
    o_ref[...] = y.astype(o_ref.dtype)


def text_similarity_forward(x, w1, b1, w2, b2, *, use_bf16=False, tm=512):
    """x: (B, 300) f32; w1: (300,128); b1: (128,); w2: (128,300); b2: (300,) -> (B, 300) f32."""
    B = x.shape[0]
    compute_dtype = jnp.bfloat16 if use_bf16 else jnp.float32
    itemsize = jnp.dtype(compute_dtype).itemsize

    # Batch tile: multiple of the dtype's sublane pack, capped at `tm`; pad batch to whole tiles.
    sublane = 16 if use_bf16 else 8
    TM = min(_round_up(tm, sublane), _round_up(B, sublane))
    B_pad = _round_up(B, TM)
    n_tiles = B_pad // TM

    # Zero-pad feature dims to lane-dense 384 and batch to B_pad (zeros are inert in matmul;
    # padded output rows/cols are sliced off below).
    x_p = jnp.pad(x, ((0, B_pad - B), (0, IN_PAD - IN_DIM))).astype(compute_dtype)
    w1_p = jnp.pad(w1, ((0, IN_PAD - IN_DIM), (0, 0))).astype(compute_dtype)
    w2_p = jnp.pad(w2, ((0, 0), (0, OUT_PAD - OUT_DIM))).astype(compute_dtype)
    b1_p = b1.reshape(1, HID_DIM).astype(jnp.float32)
    b2_p = jnp.pad(b2, (0, OUT_PAD - OUT_DIM)).reshape(1, OUT_PAD).astype(jnp.float32)

    # Double-buffered activation tiles (input in compute dtype, output f32) + resident
    # weights/biases + headroom; cap well under v7x's 64 MiB physical VMEM.
    vmem_limit = int(
        2 * TM * IN_PAD * itemsize          # x tiles (double-buffered)
        + 2 * TM * OUT_PAD * 4              # out tiles (double-buffered, f32)
        + (IN_PAD * HID_DIM + HID_DIM * OUT_PAD) * itemsize
        + (HID_DIM + OUT_PAD) * 4
        + (8 << 20)
    )
    vmem_limit = min(vmem_limit, 48 << 20)

    cost = pl.CostEstimate(
        flops=2 * B * (IN_DIM * HID_DIM + HID_DIM * OUT_DIM),
        transcendentals=0,
        bytes_accessed=B * IN_DIM * itemsize + B * OUT_DIM * 4
        + (IN_DIM * HID_DIM + HID_DIM * OUT_DIM) * itemsize
        + (HID_DIM + OUT_DIM) * 4,
    )

    out = pl.pallas_call(
        _mlp_kernel,
        out_shape=jax.ShapeDtypeStruct((B_pad, OUT_PAD), jnp.float32),
        grid=(n_tiles,),
        in_specs=[
            pl.BlockSpec((TM, IN_PAD), lambda i: (i, 0)),       # streamed per batch tile
            pl.BlockSpec((IN_PAD, HID_DIM), lambda i: (0, 0)),  # VMEM-resident weights
            pl.BlockSpec((1, HID_DIM), lambda i: (0, 0)),
            pl.BlockSpec((HID_DIM, OUT_PAD), lambda i: (0, 0)),
            pl.BlockSpec((1, OUT_PAD), lambda i: (0, 0)),
        ],
        out_specs=pl.BlockSpec((TM, OUT_PAD), lambda i: (i, 0)),
        compiler_params=pltpu.CompilerParams(
            dimension_semantics=("parallel",),  # batch tiles shard across TCs on v7x
            vmem_limit_bytes=vmem_limit,
        ),
        cost_estimate=cost,
    )(x_p, w1_p, b1_p, w2_p, b2_p)

    return out[:B, :OUT_DIM]


def init_params(key):
    # Deterministic init mimicking nn.Linear's uniform(-1/sqrt(fan_in), 1/sqrt(fan_in)).
    # Weights stored as (in_features, out_features) so y = x @ W + b == PyTorch x @ W.T + b.
    k1, k2, k3, k4 = jax.random.split(key, 4)
    bound1 = 1.0 / jnp.sqrt(IN_DIM)
    bound2 = 1.0 / jnp.sqrt(HID_DIM)
    w1 = jax.random.uniform(k1, (IN_DIM, HID_DIM), jnp.float32, -bound1, bound1)
    b1 = jax.random.uniform(k2, (HID_DIM,), jnp.float32, -bound1, bound1)
    w2 = jax.random.uniform(k3, (HID_DIM, OUT_DIM), jnp.float32, -bound2, bound2)
    b2 = jax.random.uniform(k4, (OUT_DIM,), jnp.float32, -bound2, bound2)
    return w1, b1, w2, b2


def reference_forward(x, w1, b1, w2, b2):
    h = jnp.maximum(x @ w1 + b1, 0.0)
    return h @ w2 + b2


if __name__ == "__main__":
    key = jax.random.PRNGKey(0)
    kx, kp = jax.random.split(key)

    batch = 8
    x = jax.random.normal(kx, (batch, IN_DIM), jnp.float32)
    w1, b1, w2, b2 = init_params(kp)

    out = jax.block_until_ready(text_similarity_forward(x, w1, b1, w2, b2))
    ref = reference_forward(x, w1, b1, w2, b2)
    assert out.shape == (batch, OUT_DIM)
    assert jnp.allclose(out, ref, atol=1e-4, rtol=1e-4)

    # bf16 compute path (halves streamed bytes on v6e/v7x); f32 accumulation, looser tolerance.
    out_bf16 = jax.block_until_ready(
        text_similarity_forward(x, w1, b1, w2, b2, use_bf16=True))
    assert out_bf16.shape == (batch, OUT_DIM)
    assert jnp.allclose(out_bf16, ref, atol=5e-2, rtol=5e-2)

    print("KERNEL_OK")
</pallas_src>

<mosaic_0001>
module attributes {stable_mosaic.version = 11 : i64} {
  func.func @_mlp_kernel(%arg0: i32, %arg1: memref<8x384xf32, #tpu.memory_space<vmem>>, %arg2: memref<384x128xf32, #tpu.memory_space<vmem>>, %arg3: memref<1x128xf32, #tpu.memory_space<vmem>>, %arg4: memref<128x384xf32, #tpu.memory_space<vmem>>, %arg5: memref<1x384xf32, #tpu.memory_space<vmem>>, %arg6: memref<8x384xf32, #tpu.memory_space<vmem>>) attributes {dimension_semantics = [#tpu.dimension_semantics<parallel>], iteration_bounds = array<i64: 1>, scalar_prefetch = 0 : i64, scratch_operands = 0 : i64, tpu.core_type = #tpu.core_type<tc>, window_params = [{transform_indices = @transform_0, window_bounds = array<i64: 8, 384>}, {pipeline_mode = #tpu.pipeline_mode<synchronous>, transform_indices = @transform_1, window_bounds = array<i64: 384, 128>}, {pipeline_mode = #tpu.pipeline_mode<synchronous>, transform_indices = @transform_2, window_bounds = array<i64: 1, 128>}, {pipeline_mode = #tpu.pipeline_mode<synchronous>, transform_indices = @transform_3, window_bounds = array<i64: 128, 384>}, {pipeline_mode = #tpu.pipeline_mode<synchronous>, transform_indices = @transform_4, window_bounds = array<i64: 1, 384>}, {transform_indices = @transform_5, window_bounds = array<i64: 8, 384>}]} {
    %c0 = arith.constant 0 : index
    %c0_0 = arith.constant 0 : index
    %0 = vector.load %arg1[%c0, %c0_0] : memref<8x384xf32, #tpu.memory_space<vmem>>, vector<8x384xf32>
    %c0_1 = arith.constant 0 : index
    %c0_2 = arith.constant 0 : index
    %1 = vector.load %arg2[%c0_1, %c0_2] : memref<384x128xf32, #tpu.memory_space<vmem>>, vector<384x128xf32>
    %cst = arith.constant dense<0.000000e+00> : vector<8x128xf32>
    %2 = tpu.matmul %0, %1, %cst {dimension_numbers = #tpu.dot_dimension_numbers<[1], [0], [0], [1], [0, 0, 1, 1], [], []>} : vector<8x384xf32>, vector<384x128xf32>, vector<8x128xf32> -> vector<8x128xf32>
    %c0_3 = arith.constant 0 : index
    %c0_4 = arith.constant 0 : index
    %3 = vector.load %arg3[%c0_3, %c0_4] : memref<1x128xf32, #tpu.memory_space<vmem>>, vector<1x128xf32>
    %4 = vector.broadcast %3 : vector<1x128xf32> to vector<8x128xf32>
    %5 = arith.addf %2, %4 : vector<8x128xf32>
    %cst_5 = arith.constant 0.000000e+00 : f32
    %6 = vector.broadcast %cst_5 : f32 to vector<8x128xf32>
    %7 = arith.maximumf %5, %6 : vector<8x128xf32>
    %c0_6 = arith.constant 0 : index
    %c0_7 = arith.constant 0 : index
    %8 = vector.load %arg4[%c0_6, %c0_7] : memref<128x384xf32, #tpu.memory_space<vmem>>, vector<128x384xf32>
    %cst_8 = arith.constant dense<0.000000e+00> : vector<8x384xf32>
    %9 = tpu.matmul %7, %8, %cst_8 {dimension_numbers = #tpu.dot_dimension_numbers<[1], [0], [0], [1], [0, 0, 1, 1], [], []>} : vector<8x128xf32>, vector<128x384xf32>, vector<8x384xf32> -> vector<8x384xf32>
    %c0_9 = arith.constant 0 : index
    %c0_10 = arith.constant 0 : index
    %10 = vector.load %arg5[%c0_9, %c0_10] : memref<1x384xf32, #tpu.memory_space<vmem>>, vector<1x384xf32>
    %11 = vector.broadcast %10 : vector<1x384xf32> to vector<8x384xf32>
    %12 = arith.addf %9, %11 : vector<8x384xf32>
    %c0_11 = arith.constant 0 : index
    %c0_12 = arith.constant 0 : index
    %13 = vector.load %arg6[%c0_11, %c0_12] : memref<8x384xf32, #tpu.memory_space<vmem>>, vector<8x384xf32>
    tpu.vector_store %arg6[%c0_11, %c0_12], %12 {strides = array<i32>} : memref<8x384xf32, #tpu.memory_space<vmem>>, vector<8x384xf32>,
    return
  }
  func.func @transform_0(%arg0: i32) -> (i32, i32) {
    %c0_i32 = arith.constant 0 : i32
    %c0_i32_0 = arith.constant 0 : i32
    return %arg0, %c0_i32 : i32, i32
  }
  func.func @transform_1(%arg0: i32) -> (i32, i32) {
    %c0_i32 = arith.constant 0 : i32
    %c0_i32_0 = arith.constant 0 : i32
    %c0_i32_1 = arith.constant 0 : i32
    return %c0_i32, %c0_i32_0 : i32, i32
  }
  func.func @transform_2(%arg0: i32) -> (i32, i32) {
    %c0_i32 = arith.constant 0 : i32
    %c0_i32_0 = arith.constant 0 : i32
    %c0_i32_1 = arith.constant 0 : i32
    return %c0_i32, %c0_i32_0 : i32, i32
  }
  func.func @transform_3(%arg0: i32) -> (i32, i32) {
    %c0_i32 = arith.constant 0 : i32
    %c0_i32_0 = arith.constant 0 : i32
    %c0_i32_1 = arith.constant 0 : i32
    return %c0_i32, %c0_i32_0 : i32, i32
  }
  func.func @transform_4(%arg0: i32) -> (i32, i32) {
    %c0_i32 = arith.constant 0 : i32
    %c0_i32_0 = arith.constant 0 : i32
    %c0_i32_1 = arith.constant 0 : i32
    return %c0_i32, %c0_i32_0 : i32, i32
  }
  func.func @transform_5(%arg0: i32) -> (i32, i32) {
    %c0_i32 = arith.constant 0 : i32
    %c0_i32_0 = arith.constant 0 : i32
    return %arg0, %c0_i32 : i32, i32
  }
}

</mosaic_0001>

<bundles_post_ra>
// kernel: tpu_custom_call.1
= control target key start
LH: loop header
LB: loop body
LE: loop exit
PB: predicated region body
PF: predicated region fallthrough
CT: control target
= control target key end

     0   :  { %10 = vsyncpa [#allocation3], 0  ;;  %s815_s0 = inlined_call_operand.hbm [shape: f32[8,384], index: 0, kind: input, shape index: {}]   ;;  %s816_s1 = inlined_call_operand.hbm [shape: f32[384,128], index: 1, kind: input, shape index: {}]   ;;  %s817_s2 = inlined_call_operand.vmem [shape: f32[1,128], index: 2, kind: input, shape index: {}]   ;;  %s818_s3 = inlined_call_operand.hbm [shape: f32[128,384], index: 3, kind: input, shape index: {}]   ;;  %s819_s4 = inlined_call_operand.vmem [shape: f32[1,384], index: 4, kind: input, shape index: {}]   ;;  %s820_s5 = inlined_call_operand.hbm [shape: f32[8,384], index: 5, kind: output, shape index: {}]  }
   0x1   :  { %11 = vsyncpa [#allocation6], 0 }
   0x2   :  { %12 = vsyncpa [#allocation4], 0  ;;  %s720_s18 = smov [#allocation5]  }
   0x3   :  { %s28_s19 = sshll.u32 %s720_s18, 4  ;;  %s29_s19 = int_to_ptr.vmem [resolvable:$true] %s28_s19 }
   0x4   :  { %s642_s20 = scalar_lea.vmem %s29_s19, 6144  ;;  %p647_p1 = scmp.lt.s32.totalorder %s29_s19, %s29_s19 }
   0x5   :  { %p643_p0 = scmp.ne.s32.totalorder %s29_s19, %s642_s20  ;;  %p648_p2 = scmp.lt.s32.totalorder %s642_s20, %s642_s20 }
   0x7   :  { %p649_p3 = por %p648_p2, %p647_p1 }
   0x9   :  { %p650_p4 = pnand %p649_p3, %p643_p0 }
   0xb   :  { %653 = shalt.err (!%p650_p4)
}
   0xc   :  { %s721_s21 = smov 128   ;;  %s722_s22 = smov 8  }
   0xd   :  { %34 = dma.hbm_to_vmem [thread:$0]  %s816_s1, 6144, %s29_s19, [#allocation6], %s721_s21, %s721_s21, %s722_s22  }
   0xe   :  { %s723_s25 = smov [#allocation2]   ;;  %s724_s27 = smov [#allocation7]  }
   0xf   :  { %s19_s26 = sshll.u32 %s723_s25, 4  ;;  %s42_s28 = sshll.u32 %s724_s27, 4  ;;  %s20_s26 = int_to_ptr.vmem [resolvable:$true] %s19_s26  ;;  %s43_s28 = int_to_ptr.vmem [resolvable:$true] %s42_s28 }
  0x10   :  { %s662_s29 = scalar_lea.vmem %s20_s26, 384  ;;  %p667_p6 = scmp.lt.s32.totalorder %s20_s26, %s20_s26 }
  0x11   :  { %p663_p5 = scmp.ne.s32.totalorder %s20_s26, %s662_s29  ;;  %p668_p7 = scmp.lt.s32.totalorder %s662_s29, %s662_s29 }
  0x13   :  { %p669_p8 = por %p668_p7, %p667_p6 }
  0x15   :  { %p670_p9 = pnand %p669_p8, %p663_p5 }
  0x17   :  { %673 = shalt.err (!%p670_p9)
}
  0x18   :  { %22 = dma.hbm_to_vmem [thread:$0]  %s815_s0, 384, %s20_s26, [#allocation3]  }
  0x19   :  { %s682_s7 = scalar_lea.vmem %s43_s28, 6144  ;;  %p687_p11 = scmp.lt.s32.totalorder %s43_s28, %s43_s28 }
  0x1a   :  { %p683_p10 = scmp.ne.s32.totalorder %s43_s28, %s682_s7  ;;  %p688_p12 = scmp.lt.s32.totalorder %s682_s7, %s682_s7 }
  0x1c   :  { %p689_p13 = por %p688_p12, %p687_p11 }
  0x1e   :  { %p690_p0 = pnand %p689_p13, %p683_p10 }
  0x20   :  { %693 = shalt.err (!%p690_p0)
}
  0x21   :  { %s725_s1 = smov 384   ;;  %s726_s8 = smov 24  }
  0x22   :  { %48 = dma.hbm_to_vmem [thread:$0]  %s818_s3, 6144, %s43_s28, [#allocation6], %s725_s1, %s725_s1, %s726_s8  }
  0x23   :  { %714 = dma.done.wait [#allocation3], 384  }
  0x24   :  { %715 = vsyncadd [#allocation3], 4294966912 }
  0x25   :  { %716 = dma.done.wait [#allocation6], 12288  }
  0x26   :  { %717 = vsyncadd [#allocation6], 4294955008  ;;  %v727_v0 = vmov 0.0   ;;  %vm728_vm0 = vmmov 0   ;;  %v94_v1 = vld [vmem:[#allocation5 + $0xf8] sm:$0xff]  ;;  %v93_v3 = vld [vmem:[#allocation5 + $0xf0] sm:$0xff] }
  0x27   :  { %554 = vmatprep.subr.mxu1 %v727_v0  ;;  %586 = vmatprep.mubr.msk.f32.mxu1 %vm728_vm0, %v727_v0  ;;  %v78_v2 = vld [vmem:[#allocation5 + $0x78] sm:$0xff]  ;;  %v77_v4 = vld [vmem:[#allocation5 + $0x70] sm:$0xff]  ;;  %v92_v5 = vld [vmem:[#allocation5 + $0xe8] sm:$0xff] }
  0x28   :  { %485 = vmatprep.subr.mxu0 %v94_v1  ;;  %v110_v6 = vld [vmem:[#allocation5 + $0x178] sm:$0xff]  ;;  %v76_v7 = vld [vmem:[#allocation5 + $0x68] sm:$0xff]  ;;  %v109_v8 = vld [vmem:[#allocation5 + $0x170] sm:$0xff] }
  0x29   :  { %486 = vmatpush3.msra.mxu0 %v78_v2  ;;  %555 = vmatpush3.msra.mxu1 %v110_v6  ;;  %v91_v9 = vld [vmem:[#allocation5 + $0xe0] sm:$0xff]  ;;  %v108_v10 = vld [vmem:[#allocation5 + $0x168] sm:$0xff]  ;;  %v90_v12 = vld [vmem:[#allocation5 + $0xd8] sm:$0xff] }
  0x2a   :  { %487 = vmatprep.subr.mxu0 %v93_v3  ;;  %556 = vmatprep.subr.mxu1 %v727_v0  ;;  %v75_v11 = vld [vmem:[#allocation5 + $0x60] sm:$0xff]  ;;  %v74_v14 = vld [vmem:[#allocation5 + $0x58] sm:$0xff]  ;;  %v89_v15 = vld [vmem:[#allocation5 + $0xd0] sm:$0xff] }
  0x2b   :  { %488 = vmatpush3.msra.mxu0 %v77_v4  ;;  %557 = vmatpush3.msra.mxu1 %v109_v8  ;;  %v107_v13 = vld [vmem:[#allocation5 + $0x160] sm:$0xff]  ;;  %v106_v16 = vld [vmem:[#allocation5 + $0x158] sm:$0xff]  ;;  %v73_v17 = vld [vmem:[#allocation5 + $0x50] sm:$0xff] }
  0x2c   :  { %489 = vmatprep.subr.mxu0 %v92_v5  ;;  %558 = vmatprep.subr.mxu1 %v727_v0  ;;  %v88_v18 = vld [vmem:[#allocation5 + $0xc8] sm:$0xff]  ;;  %v105_v19 = vld [vmem:[#allocation5 + $0x150] sm:$0xff]  ;;  %v87_v21 = vld [vmem:[#allocation5 + $0xc0] sm:$0xff] }
  0x2d   :  { %490 = vmatpush3.msra.mxu0 %v76_v7  ;;  %559 = vmatpush3.msra.mxu1 %v108_v10  ;;  %v72_v20 = vld [vmem:[#allocation5 + $0x48] sm:$0xff]  ;;  %v71_v23 = vld [vmem:[#allocation5 + $0x40] sm:$0xff]  ;;  %v86_v24 = vld [vmem:[#allocation5 + $0xb8] sm:$0xff] }
  0x2e   :  { %491 = vmatprep.subr.mxu0 %v91_v9  ;;  %560 = vmatprep.subr.mxu1 %v727_v0  ;;  %v104_v22 = vld [vmem:[#allocation5 + $0x148] sm:$0xff]  ;;  %v103_v25 = vld [vmem:[#allocation5 + $0x140] sm:$0xff]  ;;  %v70_v26 = vld [vmem:[#allocation5 + $0x38] sm:$0xff] }
  0x2f   :  { %492 = vmatpush3.msra.mxu0 %v75_v11  ;;  %561 = vmatpush3.msra.mxu1 %v107_v13  ;;  %v85_v27 = vld [vmem:[#allocation5 + $0xb0] sm:$0xff]  ;;  %v102_v28 = vld [vmem:[#allocation5 + $0x138] sm:$0xff]  ;;  %v84_v30 = vld [vmem:[#allocation5 + $0xa8] sm:$0xff] }
  0x30   :  { %493 = vmatprep.subr.mxu0 %v90_v12  ;;  %562 = vmatprep.subr.mxu1 %v727_v0  ;;  %v69_v29 = vld [vmem:[#allocation5 + $0x30] sm:$0xff]  ;;  %v68_v32 = vld [vmem:[#allocation5 + $0x28] sm:$0xff]  ;;  %v83_v33 = vld [vmem:[#allocation5 + $0xa0] sm:$0xff] }
  0x31   :  { %494 = vmatpush3.msra.mxu0 %v74_v14  ;;  %563 = vmatpush3.msra.mxu1 %v106_v16  ;;  %v101_v31 = vld [vmem:[#allocation5 + $0x130] sm:$0xff]  ;;  %v100_v34 = vld [vmem:[#allocation5 + $0x128] sm:$0xff]  ;;  %v67_v35 = vld [vmem:[#allocation5 + $0x20] sm:$0xff] }
  0x32   :  { %495 = vmatprep.subr.mxu0 %v89_v15  ;;  %564 = vmatprep.subr.mxu1 %v727_v0  ;;  %v82_v36 = vld [vmem:[#allocation5 + $0x98] sm:$0xff]  ;;  %v99_v37 = vld [vmem:[#allocation5 + $0x120] sm:$0xff]  ;;  %v81_v39 = vld [vmem:[#allocation5 + $0x90] sm:$0xff] }
  0x33   :  { %496 = vmatpush3.msra.mxu0 %v73_v17  ;;  %565 = vmatpush3.msra.mxu1 %v105_v19  ;;  %v66_v38 = vld [vmem:[#allocation5 + $0x18] sm:$0xff]  ;;  %v65_v41 = vld [vmem:[#allocation5 + $0x10] sm:$0xff]  ;;  %v80_v42 = vld [vmem:[#allocation5 + $0x88] sm:$0xff] }
  0x34   :  { %497 = vmatprep.subr.mxu0 %v88_v18  ;;  %566 = vmatprep.subr.mxu1 %v727_v0  ;;  %v98_v40 = vld [vmem:[#allocation5 + $0x118] sm:$0xff]  ;;  %v61_v43 = vld [vmem:[#allocation2 + $0x8] sm:$0xff]  ;;  %v64_v44 = vld [vmem:[#allocation5 + $0x8] sm:$0xff] }
  0x35   :  { %498 = vmatpush3.msra.mxu0 %v72_v20  ;;  %567 = vmatpush3.msra.mxu1 %v104_v22  ;;  %v97_v45 = vld [vmem:[#allocation5 + $0x110] sm:$0xff]  ;;  %v79_v46 = vld [vmem:[#allocation5 + $0x80] sm:$0xff]  ;;  %v96_v48 = vld [vmem:[#allocation5 + $0x108] sm:$0xff] }
  0x36   :  { %499 = vmatprep.subr.mxu0 %v87_v21  ;;  %568 = vmatprep.subr.mxu1 %v727_v0  ;;  %v63_v47 = vld [vmem:[#allocation5] sm:$0xff]  ;;  %v60_v49 = vld [vmem:[#allocation2] sm:$0xff]  ;;  %v305_v51 = vld [vmem:[#allocation7 + $0x170] sm:$0xff] }
  0x37   :  { %500 = vmatpush3.msra.mxu0 %v71_v23  ;;  %569 = vmatpush3.msra.mxu1 %v103_v25  ;;  %v95_v50 = vld [vmem:[#allocation5 + $0x100] sm:$0xff]  ;;  %v62_v52 = vld [vmem:[#allocation2 + $0x10] sm:$0xff]  ;;  %v304_v53 = vld [vmem:[#allocation7 + $0x168] sm:$0xff] }
  0x38   :  { %501 = vmatprep.subr.mxu0 %v86_v24  ;;  %570 = vmatprep.subr.mxu1 %v727_v0  ;;  %v306_v54 = vld [vmem:[#allocation7 + $0x178] sm:$0xff]  ;;  %v301_v56 = vld [vmem:[#allocation7 + $0x150] sm:$0xff]  ;;  %v303_v57 = vld [vmem:[#allocation7 + $0x160] sm:$0xff] }
  0x39   :  { %502 = vmatpush3.msra.mxu0 %v70_v26  ;;  %571 = vmatpush3.msra.mxu1 %v102_v28  ;;  %v302_v55 = vld [vmem:[#allocation7 + $0x158] sm:$0xff]  ;;  %v299_v58 = vld [vmem:[#allocation7 + $0x140] sm:$0xff]  ;;  %v300_v60 = vld [vmem:[#allocation7 + $0x148] sm:$0xff] }
  0x3a   :  { %503 = vmatprep.subr.mxu0 %v85_v27  ;;  %572 = vmatprep.subr.mxu1 %v727_v0  ;;  %v298_v59 = vld [vmem:[#allocation7 + $0x138] sm:$0xff]  ;;  %v296_v61 = vld [vmem:[#allocation7 + $0x128] sm:$0xff]  ;;  %v295_v62 = vld [vmem:[#allocation7 + $0x120] sm:$0xff] }
  0x3b   :  { %504 = vmatpush3.msra.mxu0 %v69_v29  ;;  %573 = vmatpush3.msra.mxu1 %v101_v31  ;;  %v297_v63 = vld [vmem:[#allocation7 + $0x130] sm:$0xff]  ;;  %v292_v2 = vld [vmem:[#allocation7 + $0x108] sm:$0xff]  ;;  %v294_v3 = vld [vmem:[#allocation7 + $0x118] sm:$0xff] }
  0x3c   :  { %505 = vmatprep.subr.mxu0 %v84_v30  ;;  %574 = vmatprep.subr.mxu1 %v727_v0  ;;  %v293_v1 = vld [vmem:[#allocation7 + $0x110] sm:$0xff]  ;;  %v290_v4 = vld [vmem:[#allocation7 + $0xf8] sm:$0xff]  ;;  %v291_v6 = vld [vmem:[#allocation7 + $0x100] sm:$0xff] }
  0x3d   :  { %506 = vmatpush3.msra.mxu0 %v68_v32  ;;  %575 = vmatpush3.msra.mxu1 %v100_v34  ;;  %v289_v5 = vld [vmem:[#allocation7 + $0xf0] sm:$0xff]  ;;  %v287_v7 = vld [vmem:[#allocation7 + $0xe0] sm:$0xff]  ;;  %v286_v8 = vld [vmem:[#allocation7 + $0xd8] sm:$0xff] }
  0x3e   :  { %507 = vmatprep.subr.mxu0 %v83_v33  ;;  %576 = vmatprep.subr.mxu1 %v727_v0  ;;  %v288_v9 = vld [vmem:[#allocation7 + $0xe8] sm:$0xff]  ;;  %v283_v11 = vld [vmem:[#allocation7 + $0xc0] sm:$0xff]  ;;  %v285_v12 = vld [vmem:[#allocation7 + $0xd0] sm:$0xff] }
  0x3f   :  { %508 = vmatpush3.msra.mxu0 %v67_v35  ;;  %577 = vmatpush3.msra.mxu1 %v99_v37  ;;  %v284_v10 = vld [vmem:[#allocation7 + $0xc8] sm:$0xff]  ;;  %v281_v13 = vld [vmem:[#allocation7 + $0xb0] sm:$0xff]  ;;  %v282_v15 = vld [vmem:[#allocation7 + $0xb8] sm:$0xff] }
  0x40   :  { %509 = vmatprep.subr.mxu0 %v82_v36  ;;  %578 = vmatprep.subr.mxu1 %v727_v0  ;;  %v280_v14 = vld [vmem:[#allocation7 + $0xa8] sm:$0xff]  ;;  %v278_v16 = vld [vmem:[#allocation7 + $0x98] sm:$0xff]  ;;  %v277_v17 = vld [vmem:[#allocation7 + $0x90] sm:$0xff] }
  0x41   :  { %510 = vmatpush3.msra.mxu0 %v66_v38  ;;  %579 = vmatpush3.msra.mxu1 %v98_v40  ;;  %v279_v18 = vld [vmem:[#allocation7 + $0xa0] sm:$0xff]  ;;  %v274_v20 = vld [vmem:[#allocation7 + $0x78] sm:$0xff]  ;;  %v276_v21 = vld [vmem:[#allocation7 + $0x88] sm:$0xff] }
  0x42   :  { %511 = vmatprep.subr.mxu0 %v81_v39  ;;  %580 = vmatprep.subr.mxu1 %v727_v0  ;;  %v275_v19 = vld [vmem:[#allocation7 + $0x80] sm:$0xff]  ;;  %v272_v22 = vld [vmem:[#allocation7 + $0x68] sm:$0xff]  ;;  %v273_v24 = vld [vmem:[#allocation7 + $0x70] sm:$0xff] }
  0x43   :  { %512 = vmatpush3.msra.mxu0 %v65_v41  ;;  %182 = vmatprep.mubr.f32.mxu0 %v61_v43  ;;  %v271_v23 = vld [vmem:[#allocation7 + $0x60] sm:$0xff]  ;;  %v269_v25 = vld [vmem:[#allocation7 + $0x50] sm:$0xff]  ;;  %v268_v26 = vld [vmem:[#allocation7 + $0x48] sm:$0xff] }
  0x44   :  { %513 = vmatprep.subr.mxu0 %v80_v42  ;;  %581 = vmatpush3.msra.mxu1 %v97_v45  ;;  %v270_v27 = vld [vmem:[#allocation7 + $0x58] sm:$0xff]  ;;  %v265_v29 = vld [vmem:[#allocation7 + $0x30] sm:$0xff]  ;;  %v267_v30 = vld [vmem:[#allocation7 + $0x40] sm:$0xff] }
  0x45   :  { %514 = vmatpush3.msra.mxu0 %v64_v44  ;;  %582 = vmatprep.subr.mxu1 %v727_v0  ;;  %v266_v28 = vld [vmem:[#allocation7 + $0x38] sm:$0xff]  ;;  %v263_v31 = vld [vmem:[#allocation7 + $0x20] sm:$0xff]  ;;  %v264_v33 = vld [vmem:[#allocation7 + $0x28] sm:$0xff] }
  0x46   :  { %515 = vmatprep.subr.mxu0 %v79_v46  ;;  %583 = vmatpush3.msra.mxu1 %v96_v48  ;;  %v262_v32 = vld [vmem:[#allocation7 + $0x18] sm:$0xff]  ;;  %v260_v34 = vld [vmem:[#allocation7 + $0x8] sm:$0xff]  ;;  %v259_v35 = vld [vmem:[#allocation7] sm:$0xff]  ;;  %v309_v46 = vlaneseq }
  0x47   :  { %516 = vmatpush3.msra.mxu0 %v63_v47  ;;  %584 = vmatprep.subr.mxu1 %v727_v0  ;;  %v261_v36 = vld [vmem:[#allocation7 + $0x10] sm:$0xff]  ;;  %v484_v39 = vld [vmem:[%s817_s2] ss:$0 sm:$0xff]  ;;  %s729_s2 = smov [#allocation8]  }
  0x48   :  { %183 = vmatmul.mubr.f32.vlgmr.msra.gmra.mxu0 %v60_v49  ;;  %585 = vmatpush3.msra.mxu1 %v95_v50  ;;  %v307_v49 = vld [vmem:[%s819_s4] sm:$0x7]  ;;  %s474_s13 = sshll.u32 %s729_s2, 4  ;;  %s475_s13 = int_to_ptr.vmem [resolvable:$true] %s474_s13 }
  0x49   :  { %324 = vmatprep.subr.mxu0 %v305_v51  ;;  %587 = vmatmul.mubr.f32.vlgmr.msra.gmra.mxu1 %v62_v52  ;;  %s694_s14 = scalar_lea.vmem %s475_s13, 384  ;;  %p699_p2 = scmp.lt.s32.totalorder %s475_s13, %s475_s13 }
  0x4a   :  { %589 = vmatprep.subr.mxu1 %v727_v0  ;;  %325 = vmatpush1.msra.mxu0 %v304_v53  ;;  %p695_p1 = scmp.ne.s32.totalorder %s475_s13, %s694_s14  ;;  %p700_p3 = scmp.lt.s32.totalorder %s694_s14, %s694_s14 }
  0x4b   :  { %590 = vmatpush3.msra.mxu1 %v306_v54  ;;  %326 = vmatprep.subr.mxu0 %v302_v55 }
  0x4c   :  { %591 = vmatprep.subr.mxu1 %v727_v0  ;;  %327 = vmatpush1.msra.mxu0 %v301_v56  ;;  %p701_p4 = por %p700_p3, %p699_p2 }
  0x4d   :  { %592 = vmatpush3.msra.mxu1 %v303_v57  ;;  %328 = vmatprep.subr.mxu0 %v299_v58 }
  0x4e   :  { %593 = vmatprep.subr.mxu1 %v727_v0  ;;  %329 = vmatpush1.msra.mxu0 %v298_v59  ;;  %p702_p5 = pnand %p701_p4, %p695_p1 }
  0x4f   :  { %594 = vmatpush3.msra.mxu1 %v300_v60  ;;  %330 = vmatprep.subr.mxu0 %v296_v61 }
  0x50   :  { %595 = vmatprep.subr.mxu1 %v727_v0  ;;  %331 = vmatpush1.msra.mxu0 %v295_v62 }
  0x51   :  { %596 = vmatpush3.msra.mxu1 %v297_v63  ;;  %332 = vmatprep.subr.mxu0 %v293_v1 }
  0x52   :  { %597 = vmatprep.subr.mxu1 %v727_v0  ;;  %333 = vmatpush1.msra.mxu0 %v292_v2 }
  0x53   :  { %598 = vmatpush3.msra.mxu1 %v294_v3  ;;  %334 = vmatprep.subr.mxu0 %v290_v4 }
  0x54   :  { %599 = vmatprep.subr.mxu1 %v727_v0  ;;  %335 = vmatpush1.msra.mxu0 %v289_v5 }
  0x55   :  { %600 = vmatpush3.msra.mxu1 %v291_v6  ;;  %336 = vmatprep.subr.mxu0 %v287_v7 }
  0x56   :  { %601 = vmatprep.subr.mxu1 %v727_v0  ;;  %337 = vmatpush1.msra.mxu0 %v286_v8 }
  0x57   :  { %602 = vmatpush3.msra.mxu1 %v288_v9  ;;  %338 = vmatprep.subr.mxu0 %v284_v10 }
  0x58   :  { %603 = vmatprep.subr.mxu1 %v727_v0  ;;  %339 = vmatpush1.msra.mxu0 %v283_v11 }
  0x59   :  { %604 = vmatpush3.msra.mxu1 %v285_v12  ;;  %340 = vmatprep.subr.mxu0 %v281_v13 }
  0x5a   :  { %605 = vmatprep.subr.mxu1 %v727_v0  ;;  %341 = vmatpush1.msra.mxu0 %v280_v14 }
  0x5b   :  { %606 = vmatpush3.msra.mxu1 %v282_v15  ;;  %342 = vmatprep.subr.mxu0 %v278_v16 }
  0x5c   :  { %607 = vmatprep.subr.mxu1 %v727_v0  ;;  %343 = vmatpush1.msra.mxu0 %v277_v17 }
  0x5d   :  { %608 = vmatpush3.msra.mxu1 %v279_v18  ;;  %344 = vmatprep.subr.mxu0 %v275_v19 }
  0x5e   :  { %609 = vmatprep.subr.mxu1 %v727_v0  ;;  %388 = vmatprep.mubr.f32.mxu0 %v727_v0 }
  0x5f   :  { %621 = vmatprep.mubr.msk.f32.mxu1 %vm728_vm0, %v727_v0  ;;  %345 = vmatpush1.msra.mxu0 %v274_v20 }
  0x60   :  { %610 = vmatpush3.msra.mxu1 %v276_v21  ;;  %346 = vmatprep.subr.mxu0 %v272_v22 }
  0x61   :  { %611 = vmatprep.subr.mxu1 %v727_v0  ;;  %347 = vmatpush1.msra.mxu0 %v271_v23 }
  0x62   :  { %612 = vmatpush3.msra.mxu1 %v273_v24  ;;  %348 = vmatprep.subr.mxu0 %v269_v25 }
  0x63   :  { %613 = vmatprep.subr.mxu1 %v727_v0  ;;  %349 = vmatpush1.msra.mxu0 %v268_v26 }
  0x64   :  { %614 = vmatpush3.msra.mxu1 %v270_v27  ;;  %350 = vmatprep.subr.mxu0 %v266_v28 }
  0x65   :  { %615 = vmatprep.subr.mxu1 %v727_v0  ;;  %351 = vmatpush1.msra.mxu0 %v265_v29 }
  0x66   :  { %616 = vmatpush3.msra.mxu1 %v267_v30  ;;  %352 = vmatprep.subr.mxu0 %v263_v31 }
  0x67   :  { %617 = vmatprep.subr.mxu1 %v727_v0  ;;  %353 = vmatpush1.msra.mxu0 %v262_v32 }
  0x68   :  { %618 = vmatpush3.msra.mxu1 %v264_v33  ;;  %354 = vmatprep.subr.mxu0 %v260_v34 }
  0x69   :  { %619 = vmatprep.subr.mxu1 %v727_v0  ;;  %355 = vmatpush1.msra.mxu0 %v259_v35  ;;  %v310_v0 = vshrl.u32 %v309_v46, 7 }
  0x6a   :  { %620 = vmatpush3.msra.mxu1 %v261_v36 }
  0x6b   :  { %v311_v47 = vsub.s32 0, %v310_v0  ;;  %v319_v48 = vsub.s32 2, %v310_v0  ;;  %v315_v50 = vsub.s32 1, %v310_v0 }
  0x6d   :  { %v312_v51 = vrot.slane %v307_v49, %v311_v47  ;;  %v320_v52 = vrot.slane %v307_v49, %v319_v48  ;;  %v316_v53 = vrot.slane %v307_v49, %v315_v50 }
 0x108   :  { %v517_v37 = vpop.f32.mrf.mxu0 }
 0x109   :  { %v254_v40 = vpop.f32.mrf.mxu1 }
 0x10a   :  { %v518_v38 = vpop.f32.mrf.mxu0 }
 0x10b   :  { %v519_v41 = vadd.f32 %v518_v38, %v517_v37  ;;  %v588_v42 = vpop.f32.mrf.mxu1 }
 0x10d   :  { %v185_v43 = vadd.f32 %v519_v41, %v484_v39 }
 0x10f   :  { %v255_v44 = vadd.f32 %v254_v40, %v185_v43 }
 0x111   :  { %v258_v45 = vmax.f32 %v255_v44, 0.0 }
 0x113   :  { %389 = vmatmul.mubr.f32.vlgmr.msra.gmra.mxu0 %v258_v45  ;;  %622 = vmatmul.mubr.f32.vlgmr.msra.gmra.mxu1 %v258_v45 }
 0x1d3   :  { %v390_v54 = vpop.f32.mrf.mxu0  ;;  %v461_v55 = vpop.f32.mrf.mxu1 }
 0x1d4   :  { %v391_v56 = vadd.f32 %v390_v54, %v312_v51  ;;  %v462_v57 = vadd.f32 %v461_v55, %v320_v52 }
 0x1d5   :  { %v392_v58 = vpop.f32.mrf.mxu0  ;;  %v623_v59 = vpop.f32.mrf.mxu1 }
 0x1d6   :  { %465 = vst [vmem:[#allocation8] sm:$0xff] %v391_v56  ;;  %467 = vst [vmem:[#allocation8 + $0x10] sm:$0xff] %v462_v57  ;;  %v393_v60 = vadd.f32 %v392_v58, %v316_v53 }
 0x1d8   :  { %466 = vst [vmem:[#allocation8 + $0x8] sm:$0xff] %v393_v60 }
 0x1d9   :  { %705 = shalt.err (!%p702_p5)
}
 0x1da   :  { %477 = dma.vmem_to_hbm [thread:$0]  %s475_s13, 384, %s820_s5, [#allocation4]  }
 0x1db   :  { %718 = dma.done.wait [#allocation4], 384  }
 0x1dc   :  { %719 = vsyncadd [#allocation4], 4294966912 }
 0x1dd   :  { %481 = vsyncpa [#allocation3], 1 }
 0x1de   :  { %482 = vsyncpa [#allocation6], 1 }
 0x1df   :  { %483 = vsyncpa [#allocation4], 1 }

</bundles_post_ra>
